<compile_context>
chip_gen: v5e
topology: v5e:2x2
jax: 0.10.0
libtpu: 0.0.40
codegen_flags: <defaults>
</compile_context>

<pallas_src>
import functools

import numpy as np
import jax
import jax.numpy as jnp
from jax import lax
from jax.experimental import pallas as pl
from jax.experimental.pallas import tpu as pltpu


# Raised scoped-VMEM budget for the fused coil kernels (v6e/v5e have 128 MiB
# physical).  TODO(synk): on v7x (64 MiB) chunk the coil axis for very large
# nC*Nx*Ny instead of raising the limit further.
_VMEM_LIMIT = 64 * 1024 * 1024


# ---------------------------------------------------------------------------
# In-kernel complex matmul helpers (4 real dots, bf16 operands, f32 accum)
# ---------------------------------------------------------------------------
def _cdot2(ar, ai, br, bi):
    """Complex (ar+i*ai) @ (br+i*bi) for 2-D bf16 operands -> f32 pair."""
    rr = (jnp.dot(ar, br, preferred_element_type=jnp.float32)
          - jnp.dot(ai, bi, preferred_element_type=jnp.float32))
    ri = (jnp.dot(ar, bi, preferred_element_type=jnp.float32)
          + jnp.dot(ai, br, preferred_element_type=jnp.float32))
    return rr, ri


def _cdot_batched(ar, ai, br, bi):
    """Batched complex matmul: a (C,M,K), b (C,K,N), bf16 -> f32 pair."""
    mm = lambda u, v: jnp.einsum('cmk,ckn->cmn', u, v,
                                 preferred_element_type=jnp.float32)
    rr = mm(ar, br) - mm(ai, bi)
    ri = mm(ar, bi) + mm(ai, br)
    return rr, ri


def _coil_transform(xr, xi, lr, li, rr_, ri_, nC, Nx, Ny):
    """Per-coil complex  L @ X_c @ R  on the stacked tile X (nC, Nx, Ny).

    Right-multiply = ONE wide (nC*Nx, Ny) MXU matmul (layout-free reshape);
    left-multiply  = one batched matmul with the broadcast L matrix.
    All operands bf16, accumulation f32.
    """
    xr2 = xr.reshape(nC * Nx, Ny).astype(jnp.bfloat16)
    xi2 = xi.reshape(nC * Nx, Ny).astype(jnp.bfloat16)
    tr, ti = _cdot2(xr2, xi2, rr_, ri_)                       # (nC*Nx, Ny) f32
    tr = tr.reshape(nC, Nx, Ny).astype(jnp.bfloat16)
    ti = ti.reshape(nC, Nx, Ny).astype(jnp.bfloat16)
    lrb = jnp.broadcast_to(lr, (nC, Nx, Nx))
    lib = jnp.broadcast_to(li, (nC, Nx, Nx))
    return _cdot_batched(lrb, lib, tr, ti)                    # (nC, Nx, Ny) f32


# ---------------------------------------------------------------------------
# Wavelet transform kernel (real L, R bf16 matrices; complex data)
# ---------------------------------------------------------------------------
def _wavelet_kernel(l_ref, r_ref, xr_ref, xi_ref, yr_ref, yi_ref):
    Q, M, N = xr_ref.shape
    L = l_ref[...]                                            # (M, M) bf16
    R = r_ref[...]                                            # (N, N) bf16
    xr = xr_ref[...].reshape(Q * M, N).astype(jnp.bfloat16)
    xi = xi_ref[...].reshape(Q * M, N).astype(jnp.bfloat16)
    tr = jnp.dot(xr, R, preferred_element_type=jnp.float32)   # wide dot
    ti = jnp.dot(xi, R, preferred_element_type=jnp.float32)
    tr = tr.reshape(Q, M, N).astype(jnp.bfloat16)
    ti = ti.reshape(Q, M, N).astype(jnp.bfloat16)
    Lb = jnp.broadcast_to(L, (Q, M, M))
    mm = lambda u, v: jnp.einsum('qab,qbn->qan', u, v,
                                 preferred_element_type=jnp.float32)
    yr_ref[...] = mm(Lb, tr)
    yi_ref[...] = mm(Lb, ti)


def wavelet_transform(xr, xi, L, R):
    """out[q] = L @ X[q] @ R (real bf16 L,R).  One pallas_call, all Q fused."""
    Q, M, N = xr.shape
    # TODO(synk): for very large Q*M*N chunk Q with a grid/BlockSpec (v7x 64 MiB VMEM).
    return pl.pallas_call(
        _wavelet_kernel,
        out_shape=[jax.ShapeDtypeStruct((Q, M, N), jnp.float32)] * 2,
    )(L, R, xr, xi)


# ---------------------------------------------------------------------------
# Fused forward encode:  out_pc = mask * ( Fx @ (S_c * x_p) @ Fy^T )
# grid = (P,)  — the whole coil stack is processed per step.
# ---------------------------------------------------------------------------
def _encode_kernel(fxr_ref, fxi_ref, fytr_ref, fyti_ref, m_ref,
                   sr_ref, si_ref, xr_ref, xi_ref, or_ref, oi_ref):
    nC, Nx, Ny = sr_ref.shape
    sr, si = sr_ref[...], si_ref[...]
    xr, xi = xr_ref[...], xi_ref[...]
    cr = sr * xr - si * xi
    ci = sr * xi + si * xr
    kr, ki = _coil_transform(cr, ci, fxr_ref[...], fxi_ref[...],
                             fytr_ref[...], fyti_ref[...], nC, Nx, Ny)
    m = m_ref[...]
    or_ref[...] = m * kr
    oi_ref[...] = m * ki


def encode_fwd(xr, xi, mask, smr, smi, fxr, fxi, fytr, fyti):
    P, Nx, Ny = xr.shape
    nC = smr.shape[0]
    mat_x = pl.BlockSpec((Nx, Nx), lambda p: (0, 0))
    mat_y = pl.BlockSpec((Ny, Ny), lambda p: (0, 0))
    m_spec = pl.BlockSpec((Nx, Ny), lambda p: (0, 0))
    s_spec = pl.BlockSpec((nC, Nx, Ny), lambda p: (0, 0, 0))
    x_spec = pl.BlockSpec((None, Nx, Ny), lambda p: (p, 0, 0))
    o_spec = pl.BlockSpec((None, nC, Nx, Ny), lambda p: (p, 0, 0, 0))
    return pl.pallas_call(
        _encode_kernel,
        out_shape=[jax.ShapeDtypeStruct((P, nC, Nx, Ny), jnp.float32)] * 2,
        grid=(P,),
        in_specs=[mat_x, mat_x, mat_y, mat_y, m_spec, s_spec, s_spec,
                  x_spec, x_spec],
        out_specs=[o_spec, o_spec],
        compiler_params=pltpu.CompilerParams(
            dimension_semantics=("parallel",),
            vmem_limit_bytes=_VMEM_LIMIT),
    )(fxr, fxi, fytr, fyti, mask, smr, smi, xr, xi)


# ---------------------------------------------------------------------------
# Fused adjoint decode:  out_p = sum_c conj(S_c) * ( Fxi @ (mask * y_pc) @ Fyi^T )
# grid = (P,)  — coil reduction happens in-register (no scratch accumulator).
# ---------------------------------------------------------------------------
def _decode_kernel(gxr_ref, gxi_ref, gytr_ref, gyti_ref, m_ref,
                   sr_ref, si_ref, yr_ref, yi_ref, or_ref, oi_ref):
    nC, Nx, Ny = sr_ref.shape
    m = m_ref[...]
    yr = m * yr_ref[...]
    yi = m * yi_ref[...]
    ir_, ii_ = _coil_transform(yr, yi, gxr_ref[...], gxi_ref[...],
                               gytr_ref[...], gyti_ref[...], nC, Nx, Ny)
    sr, si = sr_ref[...], si_ref[...]
    ar = sr * ir_ + si * ii_            # Re(conj(s) * i)
    ai = sr * ii_ - si * ir_            # Im(conj(s) * i)
    or_ref[...] = jnp.sum(ar, axis=0)
    oi_ref[...] = jnp.sum(ai, axis=0)


def decode_adj(yr, yi, mask, smr, smi, gxr, gxi, gytr, gyti):
    P, nC, Nx, Ny = yr.shape
    mat_x = pl.BlockSpec((Nx, Nx), lambda p: (0, 0))
    mat_y = pl.BlockSpec((Ny, Ny), lambda p: (0, 0))
    m_spec = pl.BlockSpec((Nx, Ny), lambda p: (0, 0))
    s_spec = pl.BlockSpec((nC, Nx, Ny), lambda p: (0, 0, 0))
    d_spec = pl.BlockSpec((None, nC, Nx, Ny), lambda p: (p, 0, 0, 0))
    o_spec = pl.BlockSpec((None, Nx, Ny), lambda p: (p, 0, 0))
    return pl.pallas_call(
        _decode_kernel,
        out_shape=[jax.ShapeDtypeStruct((P, Nx, Ny), jnp.float32)] * 2,
        grid=(P,),
        in_specs=[mat_x, mat_x, mat_y, mat_y, m_spec, s_spec, s_spec,
                  d_spec, d_spec],
        out_specs=[o_spec, o_spec],
        compiler_params=pltpu.CompilerParams(
            dimension_semantics=("parallel",),
            vmem_limit_bytes=_VMEM_LIMIT),
    )(gxr, gxi, gytr, gyti, mask, smr, smi, yr, yi)


# ---------------------------------------------------------------------------
# Fused prox / data consistency (Roemer recon), all coils in one step:
#   per coil: k = Fx @ (S_c * x) @ Fy^T ;  k = where(mask, b, k)
#             i = Fxi @ k @ Fyi^T       ;  out = sum_c conj(S_c) * i
# ---------------------------------------------------------------------------
def _prox_kernel(fxr_ref, fxi_ref, fytr_ref, fyti_ref,
                 gxr_ref, gxi_ref, gytr_ref, gyti_ref, m_ref,
                 sr_ref, si_ref, xr_ref, xi_ref, br_ref, bi_ref,
                 or_ref, oi_ref):
    nC, Nx, Ny = sr_ref.shape
    sr, si = sr_ref[...], si_ref[...]
    xr, xi = xr_ref[...], xi_ref[...]
    cr = sr * xr - si * xi
    ci = sr * xi + si * xr
    kr, ki = _coil_transform(cr, ci, fxr_ref[...], fxi_ref[...],
                             fytr_ref[...], fyti_ref[...], nC, Nx, Ny)
    keep = m_ref[...] > 0.5
    kr = jnp.where(keep, br_ref[...], kr)
    ki = jnp.where(keep, bi_ref[...], ki)
    ir_, ii_ = _coil_transform(kr, ki, gxr_ref[...], gxi_ref[...],
                               gytr_ref[...], gyti_ref[...], nC, Nx, Ny)
    ar = sr * ir_ + si * ii_
    ai = sr * ii_ - si * ir_
    or_ref[...] = jnp.sum(ar, axis=0)
    oi_ref[...] = jnp.sum(ai, axis=0)


def prox_dc(xr, xi, mask, br, bi, smr, smi,
            fxr, fxi, fytr, fyti, gxr, gxi, gytr, gyti):
    P, Nx, Ny = xr.shape
    nC = smr.shape[0]
    mat_x = pl.BlockSpec((Nx, Nx), lambda p: (0, 0))
    mat_y = pl.BlockSpec((Ny, Ny), lambda p: (0, 0))
    m_spec = pl.BlockSpec((Nx, Ny), lambda p: (0, 0))
    s_spec = pl.BlockSpec((nC, Nx, Ny), lambda p: (0, 0, 0))
    x_spec = pl.BlockSpec((None, Nx, Ny), lambda p: (p, 0, 0))
    d_spec = pl.BlockSpec((None, nC, Nx, Ny), lambda p: (p, 0, 0, 0))
    o_spec = pl.BlockSpec((None, Nx, Ny), lambda p: (p, 0, 0))
    return pl.pallas_call(
        _prox_kernel,
        out_shape=[jax.ShapeDtypeStruct((P, Nx, Ny), jnp.float32)] * 2,
        grid=(P,),
        in_specs=[mat_x, mat_x, mat_y, mat_y, mat_x, mat_x, mat_y, mat_y,
                  m_spec, s_spec, s_spec, x_spec, x_spec, d_spec, d_spec],
        out_specs=[o_spec, o_spec],
        compiler_params=pltpu.CompilerParams(
            dimension_semantics=("parallel",),
            vmem_limit_bytes=_VMEM_LIMIT),
    )(fxr, fxi, fytr, fyti, gxr, gxi, gytr, gyti,
      mask, smr, smi, xr, xi, br, bi)


# ---------------------------------------------------------------------------
# U-Net 'same' conv: patches built IN-KERNEL from a height-padded, row-flattened
# VMEM tile (one HBM read of the activations; no im2col materialization).
# Output lane dim = H*W (lane dense); bias folded into the accumulator init.
# ---------------------------------------------------------------------------
def _conv_kernel(x_ref, w_ref, b_ref, o_ref, *, H, W, kh, kw, relu):
    pw = kw // 2
    cout = o_ref.shape[0]
    acc = jnp.broadcast_to(b_ref[...], (cout, H * W)).astype(jnp.float32)
    col = lax.broadcasted_iota(jnp.int32, (1, H * W), 1) % W
    for i in range(kh):
        for j in range(kw):
            start = i * W + j
            s = x_ref[:, start:start + H * W].astype(jnp.bfloat16)
            dj = j - pw
            if dj != 0:   # mask output columns whose tap falls outside the row
                valid = jnp.logical_and(col + dj >= 0, col + dj < W)
                s = s * valid.astype(s.dtype)
            acc = acc + jnp.dot(w_ref[i * kw + j], s,
                                preferred_element_type=jnp.float32)
    if relu:
        acc = jnp.maximum(acc, 0.0)
    o_ref[...] = acc


def conv2d(x, w, b, relu=False):
    """'Same' conv, stride 1.  x: (N,Cin,H,W) NCHW, w: (Cout,Cin,kh,kw)."""
    n, cin, H, W = x.shape
    cout, _, kh, kw = w.shape
    ph, pw = kh // 2, kw // 2
    xp = jnp.pad(x, ((0, 0), (0, 0), (ph, ph), (0, 0)))          # pad height only
    xf = xp.reshape(n, cin, (H + 2 * ph) * W)                    # row-flatten
    if pw:
        xf = jnp.pad(xf, ((0, 0), (0, 0), (pw, pw)))             # flat pad for width taps
    L = xf.shape[-1]
    wmat = jnp.transpose(w, (2, 3, 0, 1)).reshape(kh * kw, cout, cin)
    wmat = wmat.astype(jnp.bfloat16)
    # TODO(synk): for very large Cin*H*W (v7x 64 MiB VMEM) tile H inside the kernel.
    out = pl.pallas_call(
        functools.partial(_conv_kernel, H=H, W=W, kh=kh, kw=kw, relu=relu),
        out_shape=jax.ShapeDtypeStruct((n, cout, H * W), jnp.float32),
        grid=(n,),
        in_specs=[pl.BlockSpec((None, cin, L), lambda i: (i, 0, 0)),
                  pl.BlockSpec((kh * kw, cout, cin), lambda i: (0, 0, 0)),
                  pl.BlockSpec((cout, 1), lambda i: (0, 0))],
        out_specs=pl.BlockSpec((None, cout, H * W), lambda i: (i, 0, 0)),
        compiler_params=pltpu.CompilerParams(
            dimension_semantics=("parallel",),
            vmem_limit_bytes=_VMEM_LIMIT),
    )(xf, wmat, b.reshape(cout, 1))
    return out.reshape(n, cout, H, W)


def init_unet_params(key, cin=1, base=8):
    def conv_init(k, cout, cin_, ksz):
        fan_in = cin_ * ksz * ksz
        w = jax.random.normal(k, (cout, cin_, ksz, ksz), jnp.float32) * jnp.sqrt(2.0 / fan_in)
        return w, jnp.zeros((cout,), jnp.float32)

    keys = jax.random.split(key, 5)
    return {
        "enc1": conv_init(keys[0], base, cin, 3),
        "enc2": conv_init(keys[1], base, base, 3),
        "bott": conv_init(keys[2], 2 * base, base, 3),
        "dec1": conv_init(keys[3], base, 3 * base, 3),
        "out": conv_init(keys[4], cin, base, 1),
    }


def unet_forward(params, x):
    # TODO(synk): build_unet_smaller source is not provided; this is a synthesized
    # 1-level "smaller" U-Net (conv3x3/ReLU x2, maxpool, bottleneck, nearest
    # upsample, skip concat, conv3x3/ReLU, 1x1 head) with matching in/out shape.
    e1 = conv2d(x, *params["enc1"], relu=True)
    e2 = conv2d(e1, *params["enc2"], relu=True)
    n, c, H, W = e2.shape
    p = e2.reshape(n, c, H // 2, 2, W // 2, 2).max(axis=(3, 5))
    bn = conv2d(p, *params["bott"], relu=True)
    up = jnp.repeat(jnp.repeat(bn, 2, axis=2), 2, axis=3)
    cat = jnp.concatenate([up, e2], axis=1)
    d1 = conv2d(cat, *params["dec1"], relu=True)
    return conv2d(d1, *params["out"], relu=False)


# ---------------------------------------------------------------------------
# Fixed linear-operator matrices (FFT / wavelet), built once on host
# ---------------------------------------------------------------------------
def centered_dft_matrices(N):
    eye = np.eye(N)
    F = np.fft.fftshift(np.fft.fft(np.fft.ifftshift(eye, axes=0), axis=0, norm="ortho"), axes=0)
    Fi = np.fft.fftshift(np.fft.ifft(np.fft.ifftshift(eye, axes=0), axis=0, norm="ortho"), axes=0)
    return F.astype(np.complex64), Fi.astype(np.complex64)


def db2_analysis_matrix(N):
    """Orthogonal single-level periodic Daubechies-2 (4-tap) analysis matrix."""
    s3 = np.sqrt(3.0)
    h = np.array([1 + s3, 3 + s3, 3 - s3, 1 - s3], dtype=np.float64) / (4.0 * np.sqrt(2.0))
    g = np.array([h[3], -h[2], h[1], -h[0]], dtype=np.float64)
    W = np.zeros((N, N), dtype=np.float64)
    half = N // 2
    for k in range(half):
        for j in range(4):
            W[k, (2 * k + j) % N] += h[j]
            W[half + k, (2 * k + j) % N] += g[j]
    return W.astype(np.float32)


# ---------------------------------------------------------------------------
# unrolled_block forward
# ---------------------------------------------------------------------------
class UnrolledBlockPallas:
    def __init__(self, Nx, Ny, key, dc=True):
        self.dc = dc
        bf = jnp.bfloat16
        Fx, Fxi = centered_dft_matrices(Nx)
        Fy, Fyi = centered_dft_matrices(Ny)
        self.Fx_r = jnp.asarray(Fx.real, bf)
        self.Fx_i = jnp.asarray(Fx.imag, bf)
        self.FyT_r = jnp.asarray(np.ascontiguousarray(Fy.T.real), bf)
        self.FyT_i = jnp.asarray(np.ascontiguousarray(Fy.T.imag), bf)
        self.Fxi_r = jnp.asarray(Fxi.real, bf)
        self.Fxi_i = jnp.asarray(Fxi.imag, bf)
        self.FyiT_r = jnp.asarray(np.ascontiguousarray(Fyi.T.real), bf)
        self.FyiT_i = jnp.asarray(np.ascontiguousarray(Fyi.T.imag), bf)
        Wx = db2_analysis_matrix(Nx)
        Wy = db2_analysis_matrix(Ny)
        self.Wx = jnp.asarray(Wx, bf)
        self.WxT = jnp.asarray(np.ascontiguousarray(Wx.T), bf)
        self.Wy = jnp.asarray(Wy, bf)
        self.WyT = jnp.asarray(np.ascontiguousarray(Wy.T), bf)
        self.unet_params = init_unet_params(key, cin=1, base=8)

    # ---- W : wavelet transform (applyW), real matrices ----------------------
    def applyW(self, xr, xi, transp=False):
        # TODO(synk): math_utils.{wt,iwt}Daubechies2 with wavSplit recursion not
        # available; implemented as a single-level periodic db2 transform (orthogonal).
        if transp:  # inverse wavelet transform
            return wavelet_transform(xr, xi, self.WxT, self.Wy)
        return wavelet_transform(xr, xi, self.Wx, self.WyT)

    # ---- fused encode/decode (S/F/M and M/F^H/S^H) ---------------------------
    def encode(self, xr, xi, mask, smr, smi):
        return encode_fwd(xr, xi, mask, smr, smi,
                          self.Fx_r, self.Fx_i, self.FyT_r, self.FyT_i)

    def decode(self, yr, yi, mask, smr, smi):
        return decode_adj(yr, yi, mask, smr, smi,
                          self.Fxi_r, self.Fxi_i, self.FyiT_r, self.FyiT_i)

    # ---- A = M F S W^H and its adjoint --------------------------------------
    def applyA(self, xr, xi, mask, smr, smi, transp=False):
        if transp:
            ir, ii = self.decode(xr, xi, mask, smr, smi)
            return self.applyW(ir, ii, transp=False)
        ur, ui = self.applyW(xr, xi, transp=True)
        return self.encode(ur, ui, mask, smr, smi)

    # ---- gradient step; Armijo backtracking solved in closed form -----------
    def grad_desc(self, xr, xi, mask, br, bi, smr, smi):
        # A applied exactly 3 times; obj(x - a*g) is an exact quadratic in a
        # (by linearity of A), so the 250-step backtracking loop is closed-form.
        axr, axi = self.applyA(xr, xi, mask, smr, smi, transp=False)
        rr, ri = axr - br, axi - bi                                   # r = A x - b
        gr, gi = self.applyA(rr, ri, mask, smr, smi, transp=True)     # g = A^T r
        agr, agi = self.applyA(gr, gi, mask, smr, smi, transp=False)  # A g

        gx_norm = jnp.sum(gr * gr) + jnp.sum(gi * gi)
        r_ag = jnp.sum(rr * agr) + jnp.sum(ri * agi)
        ag_sq = jnp.sum(agr * agr) + jnp.sum(agi * agi)

        c = 0.9
        rho = 0.9
        alpha0 = 1e-4
        max_iters = 250
        # Armijo: 0.5||r - a*Ag||^2 < 0.5||r||^2 - a*c*||g||^2
        #   <=>   a < thresh = 2*(<r,Ag> - c*||g||^2) / ||Ag||^2   (a > 0)
        num = r_ag - c * gx_norm
        thresh = 2.0 * num / jnp.maximum(ag_sq, 1e-30)
        ratio = jnp.maximum(thresh, 1e-30) / alpha0
        log_rho = float(np.log(rho))
        k_real = jnp.log(ratio) / log_rho
        k = jnp.where(ratio > 1.0, 0.0, jnp.floor(k_real) + 1.0)
        k = jnp.where(jnp.logical_and(num > 0.0, ag_sq > 0.0),
                      k, float(max_iters - 1))
        k = jnp.clip(k, 0.0, float(max_iters - 1))
        alpha = jnp.float32(alpha0) * jnp.power(jnp.float32(rho),
                                                k.astype(jnp.float32))
        return xr - alpha * gr, xi - alpha * gi

    # ---- prox / data consistency (Roemer recon), fully fused -----------------
    def prox(self, xr, xi, mask, br, bi, smr, smi):
        return prox_dc(xr, xi, mask, br, bi, smr, smi,
                       self.Fx_r, self.Fx_i, self.FyT_r, self.FyT_i,
                       self.Fxi_r, self.Fxi_i, self.FyiT_r, self.FyiT_i)

    # ---- forward -------------------------------------------------------------
    def __call__(self, inputs):
        (xr, xi), mask, (br, bi), (smr, smi) = inputs

        xr, xi = self.grad_desc(xr, xi, mask, br, bi, smr, smi)
        or_, oi = self.applyW(xr, xi, transp=True)                 # image domain
        if self.dc:
            or_, oi = self.prox(or_, oi, mask, br, bi, smr, smi)

        # view_as_real + cat((real, imag), dim=2)  -> NCHW U-Net input, C = 1
        P, Nx, Ny = or_.shape
        stacked = jnp.concatenate([or_, oi], axis=1)               # (P, 2*Nx, Ny)
        unet_in = stacked.reshape(P, 1, 2 * Nx, Ny)
        post = unet_forward(self.unet_params, unet_in)             # (P,1,2*Nx,Ny)
        post = post.reshape(P, 2 * Nx, Ny)
        pr = post[:, :Nx, :]
        pi = post[:, Nx:, :]

        outr, outi = self.applyW(pr, pi, transp=False)             # back to wavelet coeffs
        return (outr, outi), mask, (br, bi), (smr, smi)


# ---------------------------------------------------------------------------
# Demo
# ---------------------------------------------------------------------------
if __name__ == "__main__":
    key = jax.random.PRNGKey(0)
    B, C, Nx, Ny, nCoils = 1, 1, 16, 16, 4
    P = B * C
    k1, k2, k3, k4, k5 = jax.random.split(key, 5)

    block = UnrolledBlockPallas(Nx, Ny, key=k5, dc=True)

    # synthetic ground-truth complex image and coil sensitivities
    img_r = jax.random.normal(k1, (P, Nx, Ny), jnp.float32)
    img_i = jax.random.normal(k2, (P, Nx, Ny), jnp.float32)
    smr = jax.random.normal(k3, (nCoils, Nx, Ny), jnp.float32)
    smi = jax.random.normal(k4, (nCoils, Nx, Ny), jnp.float32)
    nrm = jnp.sqrt(jnp.sum(smr ** 2 + smi ** 2, axis=0, keepdims=True))
    smr, smi = smr / nrm, smi / nrm

    # deterministic undersampling mask with fully-sampled center lines
    mask = (jax.random.uniform(jax.random.PRNGKey(42), (Nx, Ny)) < 0.4).astype(jnp.float32)
    mask = mask.at[:, Ny // 2 - 2: Ny // 2 + 2].set(1.0)

    # measured k-space data  b = M F S img   (fused encode kernel)
    br, bi = block.encode(img_r, img_i, mask, smr, smi)

    # initial wavelet coefficients  x0 = W( S^H F^H b )  (zero-filled recon)
    zfr, zfi = block.decode(br, bi, mask, smr, smi)
    x0r, x0i = block.applyW(zfr, zfi, transp=False)

    fwd = jax.jit(lambda ar, ai, m, b_r, b_i, s_r, s_i:
                  block(((ar, ai), m, (b_r, b_i), (s_r, s_i))))
    (outr, outi), _, _, _ = fwd(x0r, x0i, mask, br, bi, smr, smi)
    jax.block_until_ready(outr)
    jax.block_until_ready(outi)

    assert outr.shape == (P, Nx, Ny) and outi.shape == (P, Nx, Ny)
    assert bool(jnp.all(jnp.isfinite(outr))) and bool(jnp.all(jnp.isfinite(outi)))
    print("KERNEL_OK")
</pallas_src>

<mosaic_0001>
module attributes {stable_mosaic.version = 11 : i64} {
  func.func @_encode_kernel(%arg0: i32, %arg1: memref<16x16xbf16, #tpu.memory_space<vmem>>, %arg2: memref<16x16xbf16, #tpu.memory_space<vmem>>, %arg3: memref<16x16xbf16, #tpu.memory_space<vmem>>, %arg4: memref<16x16xbf16, #tpu.memory_space<vmem>>, %arg5: memref<16x16xf32, #tpu.memory_space<vmem>>, %arg6: memref<4x16x16xf32, #tpu.memory_space<vmem>>, %arg7: memref<4x16x16xf32, #tpu.memory_space<vmem>>, %arg8: memref<1x16x16xf32, #tpu.memory_space<vmem>>, %arg9: memref<1x16x16xf32, #tpu.memory_space<vmem>>, %arg10: memref<1x4x16x16xf32, #tpu.memory_space<vmem>>, %arg11: memref<1x4x16x16xf32, #tpu.memory_space<vmem>>) attributes {dimension_semantics = [#tpu.dimension_semantics<parallel>], iteration_bounds = array<i64: 1>, scalar_prefetch = 0 : i64, scratch_operands = 0 : i64, tpu.core_type = #tpu.core_type<tc>, window_params = [{pipeline_mode = #tpu.pipeline_mode<synchronous>, transform_indices = @transform_0, window_bounds = array<i64: 16, 16>}, {pipeline_mode = #tpu.pipeline_mode<synchronous>, transform_indices = @transform_1, window_bounds = array<i64: 16, 16>}, {pipeline_mode = #tpu.pipeline_mode<synchronous>, transform_indices = @transform_2, window_bounds = array<i64: 16, 16>}, {pipeline_mode = #tpu.pipeline_mode<synchronous>, transform_indices = @transform_3, window_bounds = array<i64: 16, 16>}, {pipeline_mode = #tpu.pipeline_mode<synchronous>, transform_indices = @transform_4, window_bounds = array<i64: 16, 16>}, {pipeline_mode = #tpu.pipeline_mode<synchronous>, transform_indices = @transform_5, window_bounds = array<i64: 4, 16, 16>}, {pipeline_mode = #tpu.pipeline_mode<synchronous>, transform_indices = @transform_6, window_bounds = array<i64: 4, 16, 16>}, {transform_indices = @transform_7, window_bounds = array<i64: 1, 16, 16>}, {transform_indices = @transform_8, window_bounds = array<i64: 1, 16, 16>}, {transform_indices = @transform_9, window_bounds = array<i64: 1, 4, 16, 16>}, {transform_indices = @transform_10, window_bounds = array<i64: 1, 4, 16, 16>}]} {
    %c0 = arith.constant 0 : index
    %c0_0 = arith.constant 0 : index
    %c0_1 = arith.constant 0 : index
    %0 = vector.load %arg6[%c0, %c0_0, %c0_1] : memref<4x16x16xf32, #tpu.memory_space<vmem>>, vector<4x16x16xf32>
    %c0_2 = arith.constant 0 : index
    %c0_3 = arith.constant 0 : index
    %c0_4 = arith.constant 0 : index
    %1 = vector.load %arg7[%c0_2, %c0_3, %c0_4] : memref<4x16x16xf32, #tpu.memory_space<vmem>>, vector<4x16x16xf32>
    %c0_5 = arith.constant 0 : index
    %c0_6 = arith.constant 0 : index
    %c0_7 = arith.constant 0 : index
    %2 = vector.load %arg8[%c0_5, %c0_6, %c0_7] : memref<1x16x16xf32, #tpu.memory_space<vmem>>, vector<1x16x16xf32>
    %3 = vector.shape_cast %2 : vector<1x16x16xf32> to vector<16x16xf32>
    %c0_8 = arith.constant 0 : index
    %c0_9 = arith.constant 0 : index
    %c0_10 = arith.constant 0 : index
    %4 = vector.load %arg9[%c0_8, %c0_9, %c0_10] : memref<1x16x16xf32, #tpu.memory_space<vmem>>, vector<1x16x16xf32>
    %5 = vector.shape_cast %4 : vector<1x16x16xf32> to vector<16x16xf32>
    %6 = vector.shape_cast %3 : vector<16x16xf32> to vector<1x16x16xf32>
    %7 = vector.broadcast %6 : vector<1x16x16xf32> to vector<4x16x16xf32>
    %8 = arith.mulf %0, %7 : vector<4x16x16xf32>
    %9 = vector.shape_cast %5 : vector<16x16xf32> to vector<1x16x16xf32>
    %10 = vector.broadcast %9 : vector<1x16x16xf32> to vector<4x16x16xf32>
    %11 = arith.mulf %1, %10 : vector<4x16x16xf32>
    %12 = arith.subf %8, %11 : vector<4x16x16xf32>
    %13 = vector.shape_cast %5 : vector<16x16xf32> to vector<1x16x16xf32>
    %14 = vector.broadcast %13 : vector<1x16x16xf32> to vector<4x16x16xf32>
    %15 = arith.mulf %0, %14 : vector<4x16x16xf32>
    %16 = vector.shape_cast %3 : vector<16x16xf32> to vector<1x16x16xf32>
    %17 = vector.broadcast %16 : vector<1x16x16xf32> to vector<4x16x16xf32>
    %18 = arith.mulf %1, %17 : vector<4x16x16xf32>
    %19 = arith.addf %15, %18 : vector<4x16x16xf32>
    %c0_11 = arith.constant 0 : index
    %c0_12 = arith.constant 0 : index
    %20 = vector.load %arg1[%c0_11, %c0_12] : memref<16x16xbf16, #tpu.memory_space<vmem>>, vector<16x16xbf16>
    %c0_13 = arith.constant 0 : index
    %c0_14 = arith.constant 0 : index
    %21 = vector.load %arg2[%c0_13, %c0_14] : memref<16x16xbf16, #tpu.memory_space<vmem>>, vector<16x16xbf16>
    %c0_15 = arith.constant 0 : index
    %c0_16 = arith.constant 0 : index
    %22 = vector.load %arg3[%c0_15, %c0_16] : memref<16x16xbf16, #tpu.memory_space<vmem>>, vector<16x16xbf16>
    %c0_17 = arith.constant 0 : index
    %c0_18 = arith.constant 0 : index
    %23 = vector.load %arg4[%c0_17, %c0_18] : memref<16x16xbf16, #tpu.memory_space<vmem>>, vector<16x16xbf16>
    %24 = vector.shape_cast %12 : vector<4x16x16xf32> to vector<64x16xf32>
    %25 = arith.truncf %24 : vector<64x16xf32> to vector<64x16xbf16>
    %26 = vector.shape_cast %19 : vector<4x16x16xf32> to vector<64x16xf32>
    %27 = arith.truncf %26 : vector<64x16xf32> to vector<64x16xbf16>
    %cst = arith.constant dense<0.000000e+00> : vector<64x16xf32>
    %28 = tpu.matmul %25, %22, %cst {dimension_numbers = #tpu.dot_dimension_numbers<[1], [0], [0], [1], [0, 0, 1, 1], [], []>} : vector<64x16xbf16>, vector<16x16xbf16>, vector<64x16xf32> -> vector<64x16xf32>
    %cst_19 = arith.constant dense<0.000000e+00> : vector<64x16xf32>
    %29 = tpu.matmul %27, %23, %cst_19 {dimension_numbers = #tpu.dot_dimension_numbers<[1], [0], [0], [1], [0, 0, 1, 1], [], []>} : vector<64x16xbf16>, vector<16x16xbf16>, vector<64x16xf32> -> vector<64x16xf32>
    %30 = arith.subf %28, %29 : vector<64x16xf32>
    %cst_20 = arith.constant dense<0.000000e+00> : vector<64x16xf32>
    %31 = tpu.matmul %25, %23, %cst_20 {dimension_numbers = #tpu.dot_dimension_numbers<[1], [0], [0], [1], [0, 0, 1, 1], [], []>} : vector<64x16xbf16>, vector<16x16xbf16>, vector<64x16xf32> -> vector<64x16xf32>
    %cst_21 = arith.constant dense<0.000000e+00> : vector<64x16xf32>
    %32 = tpu.matmul %27, %22, %cst_21 {dimension_numbers = #tpu.dot_dimension_numbers<[1], [0], [0], [1], [0, 0, 1, 1], [], []>} : vector<64x16xbf16>, vector<16x16xbf16>, vector<64x16xf32> -> vector<64x16xf32>
    %33 = arith.addf %31, %32 : vector<64x16xf32>
    %34 = vector.shape_cast %30 : vector<64x16xf32> to vector<4x16x16xf32>
    %35 = arith.truncf %34 : vector<4x16x16xf32> to vector<4x16x16xbf16>
    %36 = vector.shape_cast %33 : vector<64x16xf32> to vector<4x16x16xf32>
    %37 = arith.truncf %36 : vector<4x16x16xf32> to vector<4x16x16xbf16>
    %38 = vector.shape_cast %20 : vector<16x16xbf16> to vector<1x16x16xbf16>
    %39 = vector.broadcast %38 : vector<1x16x16xbf16> to vector<4x16x16xbf16>
    %40 = vector.shape_cast %21 : vector<16x16xbf16> to vector<1x16x16xbf16>
    %41 = vector.broadcast %40 : vector<1x16x16xbf16> to vector<4x16x16xbf16>
    "tpu.trace_start"() <{level = 10 : i32, message = "cmk,ckn->cmn"}> : () -> ()
    %cst_22 = arith.constant dense<0.000000e+00> : vector<4x16x16xf32>
    %42 = tpu.matmul %39, %35, %cst_22 {dimension_numbers = #tpu.dot_dimension_numbers<[2], [1], [1], [2], [0, 0, 0, 1, 1, 2], [0], [0]>} : vector<4x16x16xbf16>, vector<4x16x16xbf16>, vector<4x16x16xf32> -> vector<4x16x16xf32>
    %cst_23 = arith.constant dense<0.000000e+00> : vector<4x16x16xf32>
    %43 = tpu.matmul %41, %37, %cst_23 {dimension_numbers = #tpu.dot_dimension_numbers<[2], [1], [1], [2], [0, 0, 0, 1, 1, 2], [0], [0]>} : vector<4x16x16xbf16>, vector<4x16x16xbf16>, vector<4x16x16xf32> -> vector<4x16x16xf32>
    "tpu.trace_stop"() : () -> ()
    %44 = arith.subf %42, %43 : vector<4x16x16xf32>
    "tpu.trace_start"() <{level = 10 : i32, message = "cmk,ckn->cmn"}> : () -> ()
    %cst_24 = arith.constant dense<0.000000e+00> : vector<4x16x16xf32>
    %45 = tpu.matmul %39, %37, %cst_24 {dimension_numbers = #tpu.dot_dimension_numbers<[2], [1], [1], [2], [0, 0, 0, 1, 1, 2], [0], [0]>} : vector<4x16x16xbf16>, vector<4x16x16xbf16>, vector<4x16x16xf32> -> vector<4x16x16xf32>
    %cst_25 = arith.constant dense<0.000000e+00> : vector<4x16x16xf32>
    %46 = tpu.matmul %41, %35, %cst_25 {dimension_numbers = #tpu.dot_dimension_numbers<[2], [1], [1], [2], [0, 0, 0, 1, 1, 2], [0], [0]>} : vector<4x16x16xbf16>, vector<4x16x16xbf16>, vector<4x16x16xf32> -> vector<4x16x16xf32>
    "tpu.trace_stop"() : () -> ()
    %47 = arith.addf %45, %46 : vector<4x16x16xf32>
    %c0_26 = arith.constant 0 : index
    %c0_27 = arith.constant 0 : index
    %48 = vector.load %arg5[%c0_26, %c0_27] : memref<16x16xf32, #tpu.memory_space<vmem>>, vector<16x16xf32>
    %49 = vector.shape_cast %48 : vector<16x16xf32> to vector<1x16x16xf32>
    %50 = vector.broadcast %49 : vector<1x16x16xf32> to vector<4x16x16xf32>
    %51 = arith.mulf %50, %44 : vector<4x16x16xf32>
    %c0_28 = arith.constant 0 : index
    %c0_29 = arith.constant 0 : index
    %c0_30 = arith.constant 0 : index
    %c0_31 = arith.constant 0 : index
    %52 = vector.load %arg10[%c0_28, %c0_29, %c0_30, %c0_31] : memref<1x4x16x16xf32, #tpu.memory_space<vmem>>, vector<1x4x16x16xf32>
    %53 = vector.shape_cast %52 : vector<1x4x16x16xf32> to vector<4x16x16xf32>
    %54 = vector.shape_cast %51 : vector<4x16x16xf32> to vector<1x4x16x16xf32>
    tpu.vector_store %arg10[%c0_28, %c0_29, %c0_30, %c0_31], %54 {strides = array<i32>} : memref<1x4x16x16xf32, #tpu.memory_space<vmem>>, vector<1x4x16x16xf32>,
    %55 = vector.shape_cast %48 : vector<16x16xf32> to vector<1x16x16xf32>
    %56 = vector.broadcast %55 : vector<1x16x16xf32> to vector<4x16x16xf32>
    %57 = arith.mulf %56, %47 : vector<4x16x16xf32>
    %c0_32 = arith.constant 0 : index
    %c0_33 = arith.constant 0 : index
    %c0_34 = arith.constant 0 : index
    %c0_35 = arith.constant 0 : index
    %58 = vector.load %arg11[%c0_32, %c0_33, %c0_34, %c0_35] : memref<1x4x16x16xf32, #tpu.memory_space<vmem>>, vector<1x4x16x16xf32>
    %59 = vector.shape_cast %58 : vector<1x4x16x16xf32> to vector<4x16x16xf32>
    %60 = vector.shape_cast %57 : vector<4x16x16xf32> to vector<1x4x16x16xf32>
    tpu.vector_store %arg11[%c0_32, %c0_33, %c0_34, %c0_35], %60 {strides = array<i32>} : memref<1x4x16x16xf32, #tpu.memory_space<vmem>>, vector<1x4x16x16xf32>,
    return
  }
  func.func @transform_0(%arg0: i32) -> (i32, i32) {
    %c0_i32 = arith.constant 0 : i32
    %c0_i32_0 = arith.constant 0 : i32
    %c0_i32_1 = arith.constant 0 : i32
    return %c0_i32, %c0_i32_0 : i32, i32
  }
  func.func @transform_1(%arg0: i32) -> (i32, i32) {
    %c0_i32 = arith.constant 0 : i32
    %c0_i32_0 = arith.constant 0 : i32
    %c0_i32_1 = arith.constant 0 : i32
    return %c0_i32, %c0_i32_0 : i32, i32
  }
  func.func @transform_2(%arg0: i32) -> (i32, i32) {
    %c0_i32 = arith.constant 0 : i32
    %c0_i32_0 = arith.constant 0 : i32
    %c0_i32_1 = arith.constant 0 : i32
    return %c0_i32, %c0_i32_0 : i32, i32
  }
  func.func @transform_3(%arg0: i32) -> (i32, i32) {
    %c0_i32 = arith.constant 0 : i32
    %c0_i32_0 = arith.constant 0 : i32
    %c0_i32_1 = arith.constant 0 : i32
    return %c0_i32, %c0_i32_0 : i32, i32
  }
  func.func @transform_4(%arg0: i32) -> (i32, i32) {
    %c0_i32 = arith.constant 0 : i32
    %c0_i32_0 = arith.constant 0 : i32
    %c0_i32_1 = arith.constant 0 : i32
    return %c0_i32, %c0_i32_0 : i32, i32
  }
  func.func @transform_5(%arg0: i32) -> (i32, i32, i32) {
    %c0_i32 = arith.constant 0 : i32
    %c0_i32_0 = arith.constant 0 : i32
    %c0_i32_1 = arith.constant 0 : i32
    %c0_i32_2 = arith.constant 0 : i32
    return %c0_i32, %c0_i32_0, %c0_i32_1 : i32, i32, i32
  }
  func.func @transform_6(%arg0: i32) -> (i32, i32, i32) {
    %c0_i32 = arith.constant 0 : i32
    %c0_i32_0 = arith.constant 0 : i32
    %c0_i32_1 = arith.constant 0 : i32
    %c0_i32_2 = arith.constant 0 : i32
    return %c0_i32, %c0_i32_0, %c0_i32_1 : i32, i32, i32
  }
  func.func @transform_7(%arg0: i32) -> (i32, i32, i32) {
    %c0_i32 = arith.constant 0 : i32
    %c0_i32_0 = arith.constant 0 : i32
    %c0_i32_1 = arith.constant 0 : i32
    return %arg0, %c0_i32, %c0_i32_0 : i32, i32, i32
  }
  func.func @transform_8(%arg0: i32) -> (i32, i32, i32) {
    %c0_i32 = arith.constant 0 : i32
    %c0_i32_0 = arith.constant 0 : i32
    %c0_i32_1 = arith.constant 0 : i32
    return %arg0, %c0_i32, %c0_i32_0 : i32, i32, i32
  }
  func.func @transform_9(%arg0: i32) -> (i32, i32, i32, i32) {
    %c0_i32 = arith.constant 0 : i32
    %c0_i32_0 = arith.constant 0 : i32
    %c0_i32_1 = arith.constant 0 : i32
    %c0_i32_2 = arith.constant 0 : i32
    return %arg0, %c0_i32, %c0_i32_0, %c0_i32_1 : i32, i32, i32, i32
  }
  func.func @transform_10(%arg0: i32) -> (i32, i32, i32, i32) {
    %c0_i32 = arith.constant 0 : i32
    %c0_i32_0 = arith.constant 0 : i32
    %c0_i32_1 = arith.constant 0 : i32
    %c0_i32_2 = arith.constant 0 : i32
    return %arg0, %c0_i32, %c0_i32_0, %c0_i32_1 : i32, i32, i32, i32
  }
}

</mosaic_0001>

<bundles_post_ra>
// kernel: tpu_custom_call.1
= control target key start
LH: loop header
LB: loop body
LE: loop exit
PB: predicated region body
PF: predicated region fallthrough
CT: control target
= control target key end

     0   :  { %16 = vsyncpa [#allocation3], 0  ;;  %s1418_s0 = inlined_call_operand.hbm [shape: bf16[16,16], index: 0, kind: input, shape index: {}]   ;;  %s1419_s1 = inlined_call_operand.hbm [shape: bf16[16,16], index: 1, kind: input, shape index: {}]   ;;  %s1420_s2 = inlined_call_operand.hbm [shape: bf16[16,16], index: 2, kind: input, shape index: {}]   ;;  %s1421_s3 = inlined_call_operand.hbm [shape: bf16[16,16], index: 3, kind: input, shape index: {}]   ;;  %s1422_s4 = inlined_call_operand.hbm [shape: f32[16,16], index: 4, kind: input, shape index: {}]   ;;  %s1423_s5 = inlined_call_operand.hbm [shape: f32[4,16,16], index: 5, kind: input, shape index: {}]   ;;  %s1424_s6 = inlined_call_operand.hbm [shape: f32[4,16,16], index: 6, kind: input, shape index: {}]   ;;  %s1425_s7 = inlined_call_operand.hbm [shape: f32[1,16,16], index: 7, kind: input, shape index: {}]   ;;  %s1426_s8 = inlined_call_operand.hbm [shape: f32[1,16,16], index: 8, kind: input, shape index: {}]   ;;  %s1427_s9 = inlined_call_operand.hbm [shape: f32[1,4,16,16], index: 9, kind: output, shape index: {0}]   ;;  %s1428_s10 = inlined_call_operand.hbm [shape: f32[1,4,16,16], index: 10, kind: output, shape index: {1}]  }
   0x1   :  { %17 = vsyncpa [#allocation6], 0 }
   0x2   :  { %18 = vsyncpa [#allocation9], 0 }
   0x3   :  { %19 = vsyncpa [#allocation12], 0 }
   0x4   :  { %20 = vsyncpa [#allocation15], 0 }
   0x5   :  { %21 = vsyncpa [#allocation4], 0 }
   0x6   :  { %22 = vsyncpa [#allocation19], 0  ;;  %s40_s15 = sshll.u32 %s1419_s1, 4  ;;  %s1154_s16 = smov [#allocation5]   ;;  %s41_s15 = int_to_ptr.hbm [resolvable:$true] %s40_s15 }
   0x7   :  { %s42_s17 = sshll.u32 %s1154_s16, 4  ;;  %s66_s20 = sshll.u32 %s1421_s3, 4  ;;  %s43_s17 = int_to_ptr.vmem [resolvable:$true] %s42_s17  ;;  %s67_s20 = int_to_ptr.hbm [resolvable:$true] %s66_s20 }
   0x8   :  { %s1155_s21 = smov 64   ;;  %s1156_s22 = smov 4  }
   0x9   :  { %48 = dma.hbm_to_vmem [thread:$0]  %s41_s15, 128, %s43_s17, [#allocation6], %s1155_s21, %s1155_s21, %s1156_s22  }
   0xa   :  { %s1157_s23 = smov [#allocation8]   ;;  %s92_s26 = sshll.u32 %s1423_s5, 4  ;;  %s93_s26 = int_to_ptr.hbm [resolvable:$true] %s92_s26 }
   0xb   :  { %s68_s24 = sshll.u32 %s1157_s23, 4  ;;  %s1158_s3 = smov [#allocation11]   ;;  %s69_s24 = int_to_ptr.vmem [resolvable:$true] %s68_s24 }
   0xc   :  { %74 = dma.hbm_to_vmem [thread:$0]  %s67_s20, 128, %s69_s24, [#allocation9], %s1155_s21, %s1155_s21, %s1156_s22  }
   0xd   :  { %s94_s27 = sshll.u32 %s1158_s3, 4  ;;  %s118_s30 = sshll.u32 %s1425_s7, 4  ;;  %s95_s27 = int_to_ptr.vmem [resolvable:$true] %s94_s27  ;;  %s119_s30 = int_to_ptr.hbm [resolvable:$true] %s118_s30 }
   0xe   :  { %s1159_s11 = smov 128   ;;  %s1160_s12 = smov 8  }
   0xf   :  { %100 = dma.hbm_to_vmem [thread:$0]  %s93_s26, 1024, %s95_s27, [#allocation12], %s1159_s11, %s1159_s11, %s1160_s12  }
  0x10   :  { %s1161_s13 = smov [#allocation14]   ;;  %s27_s5 = sshll.u32 %s1418_s0, 4  ;;  %s28_s5 = int_to_ptr.hbm [resolvable:$true] %s27_s5 }
  0x11   :  { %s120_s14 = sshll.u32 %s1161_s13, 4  ;;  %s53_s18 = sshll.u32 %s1420_s2, 4  ;;  %s121_s14 = int_to_ptr.vmem [resolvable:$true] %s120_s14  ;;  %s54_s18 = int_to_ptr.hbm [resolvable:$true] %s53_s18 }
  0x12   :  { %126 = dma.hbm_to_vmem [thread:$0]  %s119_s30, 256, %s121_s14, [#allocation15], %s1159_s11, %s1159_s11, %s1160_s12  }
  0x13   :  { %s1162_s19 = smov [#allocation2]   ;;  %s1163_s23 = smov [#allocation7]  }
  0x14   :  { %s29_s20 = sshll.u32 %s1162_s19, 4  ;;  %s55_s0 = sshll.u32 %s1163_s23, 4  ;;  %s30_s20 = int_to_ptr.vmem [resolvable:$true] %s29_s20  ;;  %s56_s0 = int_to_ptr.vmem [resolvable:$true] %s55_s0 }
  0x15   :  { %35 = dma.hbm_to_vmem [thread:$0]  %s28_s5, 128, %s30_s20, [#allocation3], %s1155_s21, %s1155_s21, %s1156_s22  }
  0x16   :  { %s79_s25 = sshll.u32 %s1422_s4, 4  ;;  %s105_s3 = sshll.u32 %s1424_s6, 4  ;;  %s80_s25 = int_to_ptr.hbm [resolvable:$true] %s79_s25  ;;  %s106_s3 = int_to_ptr.hbm [resolvable:$true] %s105_s3 }
  0x17   :  { %61 = dma.hbm_to_vmem [thread:$0]  %s54_s18, 128, %s56_s0, [#allocation6], %s1155_s21, %s1155_s21, %s1156_s22  }
  0x18   :  { %s1164_s27 = smov [#allocation10]   ;;  %s1165_s29 = smov [#allocation13]  }
  0x19   :  { %s81_s28 = sshll.u32 %s1164_s27, 4  ;;  %s107_s4 = sshll.u32 %s1165_s29, 4  ;;  %s82_s28 = int_to_ptr.vmem [resolvable:$true] %s81_s28  ;;  %s108_s4 = int_to_ptr.vmem [resolvable:$true] %s107_s4 }
  0x1a   :  { %87 = dma.hbm_to_vmem [thread:$0]  %s80_s25, 256, %s82_s28, [#allocation9], %s1159_s11, %s1159_s11, %s1160_s12  }
  0x1b   :  { %s131_s14 = sshll.u32 %s1426_s8, 4  ;;  %s1166_s6 = smov [#allocation16]   ;;  %s132_s14 = int_to_ptr.hbm [resolvable:$true] %s131_s14 }
  0x1c   :  { %113 = dma.hbm_to_vmem [thread:$0]  %s106_s3, 1024, %s108_s4, [#allocation12], %s1159_s11, %s1159_s11, %s1160_s12  }
  0x1d   :  { %s133_s21 = sshll.u32 %s1166_s6, 4  ;;  %s134_s21 = int_to_ptr.vmem [resolvable:$true] %s133_s21 }
  0x1e   :  { %139 = dma.hbm_to_vmem [thread:$0]  %s132_s14, 256, %s134_s21, [#allocation15], %s1159_s11, %s1159_s11, %s1160_s12  }
  0x1f   :  { %1140 = dma.done.wait [#allocation3], 128  }
  0x20   :  { %1141 = vsyncadd [#allocation3], 4294967168 }
  0x21   :  { %1142 = dma.done.wait [#allocation6], 256  }
  0x22   :  { %1143 = vsyncadd [#allocation6], 4294967040 }
  0x23   :  { %1144 = dma.done.wait [#allocation9], 384  }
  0x24   :  { %1145 = vsyncadd [#allocation9], 4294966912 }
  0x25   :  { %1146 = dma.done.wait [#allocation12], 2048  }
  0x26   :  { %1147 = vsyncadd [#allocation12], 4294965248 }
  0x27   :  { %1148 = dma.done.wait [#allocation15], 512  }
  0x28   :  { %1149 = vsyncadd [#allocation15], 4294966784  ;;  %v859_v0 = vld [vmem:[#allocation7] sm:$0xff]  ;;  %v860_v1 = vld [vmem:[#allocation8] sm:$0xff]  ;;  %vm267_vm0 = vcmask 130048   ;;  %s1167_s8 = smov [#allocation17]  }
  0x29   :  { %v177_v2 = vld [vmem:[#allocation11] sm:$0xff]  ;;  %v178_v3 = vld [vmem:[#allocation11 + $0x8] sm:$0xff]  ;;  %287 = vmatpush.bf16.msra.mxu0 %v859_v0  ;;  %334 = vmatpush.bf16.msra.mxu1 %v860_v1  ;;  %v1282_v8 = vld [vmem:[#allocation16] sm:$0xff]  ;;  %s772_s22 = sshll.u32 %s1167_s8, 4  ;;  %s774_s5 = sshll.u32 %s1427_s9, 4  ;;  %s773_s22 = int_to_ptr.vmem [resolvable:$true] %s772_s22  ;;  %s775_s5 = int_to_ptr.hbm [resolvable:$true] %s774_s5 }
  0x2a   :  { %v185_v4 = vld [vmem:[#allocation13] sm:$0xff]  ;;  %v186_v5 = vld [vmem:[#allocation13 + $0x8] sm:$0xff]  ;;  %371 = vmatpush.bf16.msra.mxu2 %v859_v0  ;;  %400 = vmatpush.bf16.msra.mxu3 %v860_v1  ;;  %v1284_v9 = vld [vmem:[#allocation16 + $0x8] sm:$0xff]  ;;  %v221_v14 = vmul.f32 %v1282_v8, %v177_v2  ;;  %s1168_s9 = smov [#allocation18]   ;;  %s787_s19 = sshll.u32 %s1428_s10, 4  ;;  %s788_s19 = int_to_ptr.hbm [resolvable:$true] %s787_s19 }
  0x2b   :  { %v1278_v6 = vld [vmem:[#allocation14] sm:$0xff]  ;;  %v1280_v7 = vld [vmem:[#allocation14 + $0x8] sm:$0xff]  ;;  %v205_v12 = vmul.f32 %v1282_v8, %v185_v4  ;;  %v206_v13 = vmul.f32 %v1284_v9, %v186_v5  ;;  %v222_v15 = vmul.f32 %v1284_v9, %v178_v3  ;;  %v179_v24 = vld [vmem:[#allocation11 + $0x10] sm:$0xff]  ;;  %s785_s7 = sshll.u32 %s1168_s9, 4  ;;  %s786_s7 = int_to_ptr.vmem [resolvable:$true] %s785_s7 }
  0x2c   :  { %v197_v10 = vmul.f32 %v1278_v6, %v177_v2  ;;  %v198_v11 = vmul.f32 %v1280_v7, %v178_v3  ;;  %v229_v16 = vmul.f32 %v1278_v6, %v185_v4  ;;  %v230_v18 = vmul.f32 %v1280_v7, %v186_v5  ;;  %v180_v25 = vld [vmem:[#allocation11 + $0x18] sm:$0xff]  ;;  %v187_v26 = vld [vmem:[#allocation13 + $0x10] sm:$0xff]  ;;  %v181_v42 = vld [vmem:[#allocation11 + $0x20] sm:$0xff] }
  0x2d   :  { %v188_v27 = vld [vmem:[#allocation13 + $0x18] sm:$0xff]  ;;  %v199_v28 = vmul.f32 %v1278_v6, %v179_v24  ;;  %v200_v29 = vmul.f32 %v1280_v7, %v180_v25  ;;  %v207_v30 = vmul.f32 %v1282_v8, %v187_v26  ;;  %v223_v32 = vmul.f32 %v1282_v8, %v179_v24  ;;  %v182_v43 = vld [vmem:[#allocation11 + $0x28] sm:$0xff]  ;;  %v189_v44 = vld [vmem:[#allocation13 + $0x20] sm:$0xff] }
  0x2e   :  { %v213_v17 = vsub.f32 %v197_v10, %v205_v12  ;;  %v214_v19 = vsub.f32 %v198_v11, %v206_v13  ;;  %v237_v20 = vadd.f32 %v229_v16, %v221_v14  ;;  %v238_v21 = vadd.f32 %v230_v18, %v222_v15  ;;  %v190_v45 = vld [vmem:[#allocation13 + $0x28] sm:$0xff]  ;;  %v183_v60 = vld [vmem:[#allocation11 + $0x30] sm:$0xff]  ;;  %v184_v61 = vld [vmem:[#allocation11 + $0x38] sm:$0xff] }
  0x2f   :  { %v208_v31 = vmul.f32 %v1284_v9, %v188_v27  ;;  %v224_v33 = vmul.f32 %v1284_v9, %v180_v25  ;;  %v231_v34 = vmul.f32 %v1278_v6, %v187_v26  ;;  %v232_v35 = vmul.f32 %v1280_v7, %v188_v27  ;;  %v191_v62 = vld [vmem:[#allocation13 + $0x30] sm:$0xff]  ;;  %v192_v63 = vld [vmem:[#allocation13 + $0x38] sm:$0xff] }
  0x30   :  { %v253_v22 = vpack.c.bf16 %v214_v19, %v213_v17  ;;  %v257_v23 = vpack.c.bf16 %v238_v21, %v237_v20  ;;  %v215_v36 = vsub.f32 %v199_v28, %v207_v30  ;;  %v201_v46 = vmul.f32 %v1278_v6, %v181_v42 }
  0x31   :  { %v216_v37 = vsub.f32 %v200_v29, %v208_v31  ;;  %v239_v38 = vadd.f32 %v231_v34, %v223_v32  ;;  %v240_v39 = vadd.f32 %v232_v35, %v224_v33  ;;  %v202_v47 = vmul.f32 %v1280_v7, %v182_v43  ;;  %v1334_v34 = vld [vmem:[#allocation2] sm:$0xff] }
  0x32   :  { %813 = vmatmul.msk.bf16.vlgmr.msra.gmra.mxu0 %vm267_vm0, %v253_v22  ;;  %829 = vmatmul.msk.bf16.vlgmr.msra.gmra.mxu3 %vm267_vm0, %v253_v22  ;;  %v209_v48 = vmul.f32 %v1282_v8, %v189_v44  ;;  %v210_v49 = vmul.f32 %v1284_v9, %v190_v45  ;;  %v225_v50 = vmul.f32 %v1282_v8, %v181_v42 }
  0x33   :  { %821 = vmatmul.msk.bf16.vlgmr.msra.gmra.mxu1 %vm267_vm0, %v257_v23  ;;  %825 = vmatmul.msk.bf16.vlgmr.msra.gmra.mxu2 %vm267_vm0, %v257_v23  ;;  %v254_v40 = vpack.c.bf16 %v216_v37, %v215_v36  ;;  %v258_v41 = vpack.c.bf16 %v240_v39, %v239_v38  ;;  %v226_v51 = vmul.f32 %v1284_v9, %v182_v43 }
  0x34   :  { %v233_v52 = vmul.f32 %v1278_v6, %v189_v44  ;;  %v234_v53 = vmul.f32 %v1280_v7, %v190_v45  ;;  %v217_v54 = vsub.f32 %v201_v46, %v209_v48  ;;  %v218_v55 = vsub.f32 %v202_v47, %v210_v49 }
  0x35   :  { %v203_v0 = vmul.f32 %v1278_v6, %v183_v60  ;;  %v204_v1 = vmul.f32 %v1280_v7, %v184_v61  ;;  %v211_v2 = vmul.f32 %v1282_v8, %v191_v62  ;;  %v212_v3 = vmul.f32 %v1284_v9, %v192_v63 }
  0x36   :  { %v241_v56 = vadd.f32 %v233_v52, %v225_v50  ;;  %v242_v57 = vadd.f32 %v234_v53, %v226_v51  ;;  %v255_v58 = vpack.c.bf16 %v218_v55, %v217_v54  ;;  %v227_v4 = vmul.f32 %v1282_v8, %v183_v60 }
  0x37   :  { %v228_v5 = vmul.f32 %v1284_v9, %v184_v61  ;;  %v235_v10 = vmul.f32 %v1278_v6, %v191_v62  ;;  %v236_v11 = vmul.f32 %v1280_v7, %v192_v63  ;;  %v219_v12 = vsub.f32 %v203_v0, %v211_v2 }
  0x38   :  { %v259_v59 = vpack.c.bf16 %v242_v57, %v241_v56  ;;  %v220_v13 = vsub.f32 %v204_v1, %v212_v3  ;;  %v1338_v57 = vld [vmem:[#allocation5] sm:$0xff] }
  0x39   :  { %v243_v14 = vadd.f32 %v235_v10, %v227_v4  ;;  %v244_v15 = vadd.f32 %v236_v11, %v228_v5 }
  0x3a   :  { %v256_v16 = vpack.c.bf16 %v220_v13, %v219_v12 }
  0x3b   :  { %v260_v17 = vpack.c.bf16 %v244_v15, %v243_v14 }
  0x42   :  { %814 = vmatmul.msk.bf16.gmra.mxu0 %vm267_vm0, %v254_v40  ;;  %830 = vmatmul.msk.bf16.gmra.mxu3 %vm267_vm0, %v254_v40 }
  0x43   :  { %822 = vmatmul.msk.bf16.gmra.mxu1 %vm267_vm0, %v258_v41  ;;  %826 = vmatmul.msk.bf16.gmra.mxu2 %vm267_vm0, %v258_v41 }
  0x52   :  { %815 = vmatmul.msk.bf16.gmra.mxu0 %vm267_vm0, %v255_v58  ;;  %831 = vmatmul.msk.bf16.gmra.mxu3 %vm267_vm0, %v255_v58 }
  0x53   :  { %823 = vmatmul.msk.bf16.gmra.mxu1 %vm267_vm0, %v259_v59  ;;  %827 = vmatmul.msk.bf16.gmra.mxu2 %vm267_vm0, %v259_v59 }
  0x62   :  { %816 = vmatmul.msk.bf16.gmra.mxu0 %vm267_vm0, %v256_v16  ;;  %832 = vmatmul.msk.bf16.gmra.mxu3 %vm267_vm0, %v256_v16 }
  0x63   :  { %824 = vmatmul.msk.bf16.gmra.mxu1 %vm267_vm0, %v260_v17  ;;  %828 = vmatmul.msk.bf16.gmra.mxu2 %vm267_vm0, %v260_v17 }
  0xaf   :  { %v289_v8 = vpop.f32.mrf.mxu0 }
  0xb0   :  { %v336_v9 = vpop.f32.mrf.mxu1 }
  0xb1   :  { %v356_v18 = vsub.f32 %v289_v8, %v336_v9 }
  0xb3   :  { %v422_v21 = vpack.c.bf16 %v356_v18, %v356_v18 }
  0xb5   :  { %v402_v6 = vpop.f32.mrf.mxu3  ;;  %v445_v25 = vunpack.c.l.b16 %v422_v21 }
  0xb6   :  { %v373_v19 = vpop.f32.mrf.mxu2 }
  0xb7   :  { %v291_v7 = vpop.f32.mrf.mxu0  ;;  %v403_v22 = vadd.f32 %v402_v6, %v373_v19 }
  0xb8   :  { %v338_v20 = vpop.f32.mrf.mxu1 }
  0xb9   :  { %v357_v23 = vsub.f32 %v291_v7, %v338_v20  ;;  %v430_v26 = vpack.c.bf16 %v403_v22, %v403_v22 }
  0xbb   :  { %v423_v24 = vpack.c.bf16 %v357_v23, %v357_v23  ;;  %v533_v35 = vunpack.c.l.b16 %v430_v26 }
  0xbd   :  { %v446_v27 = vunpack.c.l.b16 %v423_v24  ;;  %v404_v28 = vpop.f32.mrf.mxu3 }
  0xbe   :  { %v375_v29 = vpop.f32.mrf.mxu2 }
  0xbf   :  { %v405_v30 = vadd.f32 %v404_v28, %v375_v29  ;;  %v294_v31 = vpop.f32.mrf.mxu0  ;;  %v447_v32 = vpack.c.b16 %v446_v27, %v445_v25 }
  0xc0   :  { %v341_v33 = vpop.f32.mrf.mxu1 }
  0xc1   :  { %v431_v36 = vpack.c.bf16 %v405_v30, %v405_v30  ;;  %459 = vmatpush.bf16.msrb.mxu0 %v447_v32  ;;  %v358_v39 = vsub.f32 %v294_v31, %v341_v33 }
  0xc3   :  { %v534_v37 = vunpack.c.l.b16 %v431_v36  ;;  %v424_v44 = vpack.c.bf16 %v358_v39, %v358_v39 }
  0xc4   :  { %837 = vmatmul.msk.bf16.vlgmr.msrb.gmra.mxu0 %vm267_vm0, %v1334_v34 }
  0xc5   :  { %v535_v38 = vpack.c.b16 %v534_v37, %v533_v35  ;;  %v407_v40 = vpop.f32.mrf.mxu3  ;;  %v468_v48 = vunpack.c.l.b16 %v424_v44 }
  0xc6   :  { %v378_v41 = vpop.f32.mrf.mxu2 }
  0xc7   :  { %547 = vmatpush.bf16.msra.mxu0 %v535_v38  ;;  %v296_v42 = vpop.f32.mrf.mxu0  ;;  %v408_v45 = vadd.f32 %v407_v40, %v378_v41 }
  0xc8   :  { %v343_v43 = vpop.f32.mrf.mxu1 }
  0xc9   :  { %v359_v46 = vsub.f32 %v296_v42, %v343_v43  ;;  %v432_v49 = vpack.c.bf16 %v408_v45, %v408_v45 }
  0xcb   :  { %629 = vmatpush.bf16.msrb.mxu0 %v447_v32  ;;  %v425_v47 = vpack.c.bf16 %v359_v46, %v359_v46  ;;  %v556_v58 = vunpack.c.l.b16 %v432_v49 }
  0xcd   :  { %v469_v50 = vunpack.c.l.b16 %v425_v47  ;;  %v409_v51 = vpop.f32.mrf.mxu3 }
  0xce   :  { %v380_v52 = vpop.f32.mrf.mxu2 }
  0xcf   :  { %v410_v53 = vadd.f32 %v409_v51, %v380_v52  ;;  %v299_v54 = vpop.f32.mrf.mxu0  ;;  %v470_v55 = vpack.c.b16 %v469_v50, %v468_v48  ;;  %v1370_v48 = vld [vmem:[#allocation10] sm:$0xff]  ;;  %v1372_v50 = vld [vmem:[#allocation10 + $0x8] sm:$0xff] }
  0xd0   :  { %v346_v56 = vpop.f32.mrf.mxu1 }
  0xd1   :  { %v433_v59 = vpack.c.bf16 %v410_v53, %v410_v53  ;;  %479 = vmatpush.bf16.msrb.mxu1 %v470_v55  ;;  %v360_v62 = vsub.f32 %v299_v54, %v346_v56 }
  0xd3   :  { %v557_v60 = vunpack.c.l.b16 %v433_v59  ;;  %v426_v3 = vpack.c.bf16 %v360_v62, %v360_v62 }
  0xd4   :  { %838 = vmatmul.msk.bf16.vlgmr.msrb.gmra.mxu1 %vm267_vm0, %v1334_v34  ;;  %845 = vmatmul.msk.bf16.vlgmr.msra.gmra.mxu0 %vm267_vm0, %v1338_v57 }
  0xd5   :  { %v558_v61 = vpack.c.b16 %v557_v60, %v556_v58  ;;  %v412_v63 = vpop.f32.mrf.mxu3  ;;  %685 = vmatpush.bf16.msra.mxu0 %v535_v38  ;;  %v488_v11 = vunpack.c.l.b16 %v426_v3 }
  0xd6   :  { %v383_v0 = vpop.f32.mrf.mxu2 }
  0xd7   :  { %567 = vmatpush.bf16.msra.mxu1 %v558_v61  ;;  %v301_v1 = vpop.f32.mrf.mxu0  ;;  %v413_v4 = vadd.f32 %v412_v63, %v383_v0 }
  0xd8   :  { %v348_v2 = vpop.f32.mrf.mxu1 }
  0xd9   :  { %v361_v5 = vsub.f32 %v301_v1, %v348_v2  ;;  %v434_v12 = vpack.c.bf16 %v413_v4, %v413_v4 }
  0xdb   :  { %643 = vmatpush.bf16.msrb.mxu1 %v470_v55  ;;  %v427_v10 = vpack.c.bf16 %v361_v5, %v361_v5  ;;  %v576_v18 = vunpack.c.l.b16 %v434_v12 }
  0xdd   :  { %v489_v13 = vunpack.c.l.b16 %v427_v10  ;;  %v414_v14 = vpop.f32.mrf.mxu3 }
  0xde   :  { %v385_v15 = vpop.f32.mrf.mxu2 }
  0xdf   :  { %v415_v16 = vadd.f32 %v414_v14, %v385_v15  ;;  %v304_v17 = vpop.f32.mrf.mxu0  ;;  %v490_v8 = vpack.c.b16 %v489_v13, %v488_v11 }
  0xe0   :  { %v351_v9 = vpop.f32.mrf.mxu1 }
  0xe1   :  { %v435_v6 = vpack.c.bf16 %v415_v16, %v415_v16  ;;  %499 = vmatpush.bf16.msrb.mxu2 %v490_v8  ;;  %v362_v20 = vsub.f32 %v304_v17, %v351_v9 }
  0xe3   :  { %v577_v19 = vunpack.c.l.b16 %v435_v6  ;;  %v428_v25 = vpack.c.bf16 %v362_v20, %v362_v20 }
  0xe4   :  { %839 = vmatmul.msk.bf16.vlgmr.msrb.gmra.mxu2 %vm267_vm0, %v1334_v34  ;;  %846 = vmatmul.msk.bf16.vlgmr.msra.gmra.mxu1 %vm267_vm0, %v1338_v57 }
  0xe5   :  { %v578_v7 = vpack.c.b16 %v577_v19, %v576_v18  ;;  %v417_v21 = vpop.f32.mrf.mxu3  ;;  %699 = vmatpush.bf16.msra.mxu1 %v558_v61  ;;  %849 = vmatmul.msk.bf16.vlgmr.msrb.gmra.mxu0 %vm267_vm0, %v1338_v57  ;;  %v508_v29 = vunpack.c.l.b16 %v428_v25 }
  0xe6   :  { %v388_v22 = vpop.f32.mrf.mxu2 }
  0xe7   :  { %587 = vmatpush.bf16.msra.mxu2 %v578_v7  ;;  %v306_v23 = vpop.f32.mrf.mxu0  ;;  %v418_v26 = vadd.f32 %v417_v21, %v388_v22 }
  0xe8   :  { %v353_v24 = vpop.f32.mrf.mxu1 }
  0xe9   :  { %v363_v27 = vsub.f32 %v306_v23, %v353_v24  ;;  %v436_v30 = vpack.c.bf16 %v418_v26, %v418_v26 }
  0xeb   :  { %657 = vmatpush.bf16.msrb.mxu2 %v490_v8  ;;  %v429_v28 = vpack.c.bf16 %v363_v27, %v363_v27  ;;  %v596_v37 = vunpack.c.l.b16 %v436_v30 }
  0xed   :  { %v509_v31 = vunpack.c.l.b16 %v429_v28  ;;  %v419_v32 = vpop.f32.mrf.mxu3 }
  0xee   :  { %v390_v33 = vpop.f32.mrf.mxu2 }
  0xef   :  { %v420_v35 = vadd.f32 %v419_v32, %v390_v33  ;;  %v510_v36 = vpack.c.b16 %v509_v31, %v508_v29 }
  0xf1   :  { %v437_v38 = vpack.c.bf16 %v420_v35, %v420_v35  ;;  %519 = vmatpush.bf16.msrb.mxu3 %v510_v36 }
  0xf3   :  { %v597_v39 = vunpack.c.l.b16 %v437_v38 }
  0xf4   :  { %840 = vmatmul.msk.bf16.vlgmr.msrb.gmra.mxu3 %vm267_vm0, %v1334_v34  ;;  %847 = vmatmul.msk.bf16.vlgmr.msra.gmra.mxu2 %vm267_vm0, %v1338_v57 }
  0xf5   :  { %v598_v40 = vpack.c.b16 %v597_v39, %v596_v37  ;;  %713 = vmatpush.bf16.msra.mxu2 %v578_v7  ;;  %850 = vmatmul.msk.bf16.vlgmr.msrb.gmra.mxu1 %vm267_vm0, %v1338_v57 }
  0xf6   :  { %853 = vmatmul.msk.bf16.vlgmr.msra.gmra.mxu0 %vm267_vm0, %v1334_v34 }
  0xf7   :  { %607 = vmatpush.bf16.msra.mxu3 %v598_v40 }
  0xfb   :  { %671 = vmatpush.bf16.msrb.mxu3 %v510_v36 }
 0x104   :  { %848 = vmatmul.msk.bf16.vlgmr.msra.gmra.mxu3 %vm267_vm0, %v1338_v57  ;;  %851 = vmatmul.msk.bf16.vlgmr.msrb.gmra.mxu2 %vm267_vm0, %v1338_v57 }
 0x105   :  { %727 = vmatpush.bf16.msra.mxu3 %v598_v40  ;;  %854 = vmatmul.msk.bf16.vlgmr.msra.gmra.mxu1 %vm267_vm0, %v1334_v34 }
 0x114   :  { %852 = vmatmul.msk.bf16.vlgmr.msrb.gmra.mxu3 %vm267_vm0, %v1338_v57  ;;  %855 = vmatmul.msk.bf16.vlgmr.msra.gmra.mxu2 %vm267_vm0, %v1334_v34 }
 0x124   :  { %856 = vmatmul.msk.bf16.vlgmr.msra.gmra.mxu3 %vm267_vm0, %v1334_v34 }
 0x141   :  { %v461_v41 = vpop.f32.mrf.mxu0 }
 0x149   :  { %v463_v42 = vpop.f32.mrf.mxu0 }
 0x151   :  { %v481_v43 = vpop.f32.mrf.mxu1  ;;  %v549_v44 = vpop.f32.mrf.mxu0 }
 0x152   :  { %v614_v46 = vsub.f32 %v461_v41, %v549_v44 }
 0x154   :  { %v736_v51 = vmul.f32 %v1370_v48, %v614_v46 }
 0x156   :  { %744 = vst.msk [vmem:[#allocation17] sm:$0xff] %vm267_vm0, %v736_v51 }
 0x159   :  { %v483_v45 = vpop.f32.mrf.mxu1  ;;  %v551_v47 = vpop.f32.mrf.mxu0 }
 0x15a   :  { %v615_v49 = vsub.f32 %v463_v42, %v551_v47 }
 0x15c   :  { %v737_v52 = vmul.f32 %v1372_v50, %v615_v49 }
 0x15e   :  { %745 = vst.msk [vmem:[#allocation17 + $0x8] sm:$0xff] %vm267_vm0, %v737_v52 }
 0x161   :  { %v569_v34 = vpop.f32.mrf.mxu1 }
 0x162   :  { %v616_v53 = vsub.f32 %v481_v43, %v569_v34  ;;  %v631_v54 = vpop.f32.mrf.mxu0 }
 0x164   :  { %v738_v55 = vmul.f32 %v1370_v48, %v616_v53 }
 0x166   :  { %746 = vst.msk [vmem:[#allocation17 + $0x10] sm:$0xff] %vm267_vm0, %v738_v55 }
 0x167   :  { %v501_v56 = vpop.f32.mrf.mxu2 }
 0x169   :  { %v571_v57 = vpop.f32.mrf.mxu1 }
 0x16a   :  { %v617_v58 = vsub.f32 %v483_v45, %v571_v57  ;;  %v633_v59 = vpop.f32.mrf.mxu0 }
 0x16c   :  { %v739_v60 = vmul.f32 %v1372_v50, %v617_v58 }
 0x16e   :  { %747 = vst.msk [vmem:[#allocation17 + $0x18] sm:$0xff] %vm267_vm0, %v739_v60 }
 0x16f   :  { %v503_v61 = vpop.f32.mrf.mxu2 }
 0x172   :  { %v645_v62 = vpop.f32.mrf.mxu1 }
 0x173   :  { %v687_v63 = vpop.f32.mrf.mxu0 }
 0x174   :  { %v688_v3 = vadd.f32 %v687_v63, %v631_v54 }
 0x176   :  { %v752_v10 = vmul.f32 %v1370_v48, %v688_v3 }
 0x177   :  { %v521_v0 = vpop.f32.mrf.mxu3  ;;  %v589_v1 = vpop.f32.mrf.mxu2 }
 0x178   :  { %v618_v2 = vsub.f32 %v501_v56, %v589_v1  ;;  %760 = vst.msk [vmem:[#allocation18] sm:$0xff] %vm267_vm0, %v752_v10 }
 0x17a   :  { %v740_v4 = vmul.f32 %v1370_v48, %v618_v2  ;;  %v647_v5 = vpop.f32.mrf.mxu1 }
 0x17b   :  { %v689_v11 = vpop.f32.mrf.mxu0 }
 0x17c   :  { %748 = vst.msk [vmem:[#allocation17 + $0x20] sm:$0xff] %vm267_vm0, %v740_v4  ;;  %v690_v12 = vadd.f32 %v689_v11, %v633_v59 }
 0x17e   :  { %v753_v13 = vmul.f32 %v1372_v50, %v690_v12 }
 0x17f   :  { %v523_v14 = vpop.f32.mrf.mxu3  ;;  %v591_v15 = vpop.f32.mrf.mxu2 }
 0x180   :  { %v619_v16 = vsub.f32 %v503_v61, %v591_v15  ;;  %761 = vst.msk [vmem:[#allocation18 + $0x8] sm:$0xff] %vm267_vm0, %v753_v13 }
 0x182   :  { %v741_v17 = vmul.f32 %v1372_v50, %v619_v16  ;;  %v701_v8 = vpop.f32.mrf.mxu1 }
 0x183   :  { %v702_v9 = vadd.f32 %v701_v8, %v645_v62 }
 0x184   :  { %749 = vst.msk [vmem:[#allocation17 + $0x28] sm:$0xff] %vm267_vm0, %v741_v17 }
 0x185   :  { %v754_v18 = vmul.f32 %v1370_v48, %v702_v9 }
 0x187   :  { %v609_v6 = vpop.f32.mrf.mxu3  ;;  %v659_v19 = vpop.f32.mrf.mxu2  ;;  %762 = vst.msk [vmem:[#allocation18 + $0x10] sm:$0xff] %vm267_vm0, %v754_v18 }
 0x188   :  { %v620_v7 = vsub.f32 %v521_v0, %v609_v6 }
 0x18a   :  { %v742_v20 = vmul.f32 %v1370_v48, %v620_v7  ;;  %v703_v21 = vpop.f32.mrf.mxu1 }
 0x18b   :  { %v704_v22 = vadd.f32 %v703_v21, %v647_v5 }
 0x18c   :  { %750 = vst.msk [vmem:[#allocation17 + $0x30] sm:$0xff] %vm267_vm0, %v742_v20 }
 0x18d   :  { %v755_v23 = vmul.f32 %v1372_v50, %v704_v22 }
 0x18f   :  { %v611_v24 = vpop.f32.mrf.mxu3  ;;  %v661_v25 = vpop.f32.mrf.mxu2  ;;  %763 = vst.msk [vmem:[#allocation18 + $0x18] sm:$0xff] %vm267_vm0, %v755_v23 }
 0x190   :  { %v621_v26 = vsub.f32 %v523_v14, %v611_v24 }
 0x192   :  { %v743_v27 = vmul.f32 %v1372_v50, %v621_v26 }
 0x194   :  { %751 = vst.msk [vmem:[#allocation17 + $0x38] sm:$0xff] %vm267_vm0, %v743_v27 }
 0x195   :  { %780 = dma.vmem_to_hbm [thread:$0]  %s773_s22, 1024, %s775_s5, [#allocation4], %s1159_s11, %s1159_s11, %s1160_s12  }
 0x197   :  { %v673_v28 = vpop.f32.mrf.mxu3  ;;  %v715_v29 = vpop.f32.mrf.mxu2 }
 0x198   :  { %v716_v30 = vadd.f32 %v715_v29, %v659_v19 }
 0x19a   :  { %v756_v31 = vmul.f32 %v1370_v48, %v716_v30 }
 0x19c   :  { %764 = vst.msk [vmem:[#allocation18 + $0x20] sm:$0xff] %vm267_vm0, %v756_v31 }
 0x19f   :  { %v675_v32 = vpop.f32.mrf.mxu3  ;;  %v717_v33 = vpop.f32.mrf.mxu2 }
 0x1a0   :  { %v718_v35 = vadd.f32 %v717_v33, %v661_v25 }
 0x1a2   :  { %v757_v36 = vmul.f32 %v1372_v50, %v718_v35 }
 0x1a4   :  { %765 = vst.msk [vmem:[#allocation18 + $0x28] sm:$0xff] %vm267_vm0, %v757_v36 }
 0x1a7   :  { %v729_v37 = vpop.f32.mrf.mxu3 }
 0x1a8   :  { %v730_v38 = vadd.f32 %v729_v37, %v673_v28 }
 0x1aa   :  { %v758_v39 = vmul.f32 %v1370_v48, %v730_v38 }
 0x1ac   :  { %766 = vst.msk [vmem:[#allocation18 + $0x30] sm:$0xff] %vm267_vm0, %v758_v39 }
 0x1af   :  { %v731_v40 = vpop.f32.mrf.mxu3 }
 0x1b0   :  { %v732_v41 = vadd.f32 %v731_v40, %v675_v32 }
 0x1b2   :  { %v759_v42 = vmul.f32 %v1372_v50, %v732_v41 }
 0x1b4   :  { %767 = vst.msk [vmem:[#allocation18 + $0x38] sm:$0xff] %vm267_vm0, %v759_v42 }
 0x1b5   :  { %793 = dma.vmem_to_hbm [thread:$0]  %s786_s7, 1024, %s788_s19, [#allocation19], %s1159_s11, %s1159_s11, %s1160_s12  }
 0x1b6   :  { %1150 = dma.done.wait [#allocation4], 1024  }
 0x1b7   :  { %1151 = vsyncadd [#allocation4], 4294966272 }
 0x1b8   :  { %1152 = dma.done.wait [#allocation19], 1024  }
 0x1b9   :  { %1153 = vsyncadd [#allocation19], 4294966272 }
 0x1ba   :  { %802 = vsyncpa [#allocation3], 1 }
 0x1bb   :  { %803 = vsyncpa [#allocation6], 1 }
 0x1bc   :  { %804 = vsyncpa [#allocation9], 1 }
 0x1bd   :  { %805 = vsyncpa [#allocation12], 1 }
 0x1be   :  { %806 = vsyncpa [#allocation15], 1 }
 0x1bf   :  { %807 = vsyncpa [#allocation4], 1 }
 0x1c0   :  { %808 = vsyncpa [#allocation19], 1 }

</bundles_post_ra>
